<compile_context>
chip_gen: v7x
topology: tpu7x:2x2x1
jax: 0.10.0
libtpu: 0.0.40
codegen_flags: <defaults>
</compile_context>

<pallas_src>
import functools

import jax
import jax.numpy as jnp
from jax import lax
from jax.experimental import pallas as pl
from jax.experimental.pallas import tpu as pltpu


_SMALL_BYTES = 256 * 1024      # below this a Pallas launch is pure overhead
_SUB_L = 256                   # in-tile relayout sub-block width (lane axis of output)
_MAX_PAD_RATIO = 1.3           # max padded/true element ratio for the padded ragged path


# ---------------------------------------------------------------------------
# Kernel body: (tL, tC) VMEM tile -> (tC, tL) VMEM tile (batch dim squeezed).
# Big DMA tiles are transposed in _SUB_L-wide sub-blocks so the DMA tile size
# (large, for long HBM bursts) is decoupled from the XLU relayout chunk size
# (small, to bound vreg/TRF live ranges).
# ---------------------------------------------------------------------------
def _transpose_kernel(x_ref, o_ref):
    tL = x_ref.shape[0]
    if tL > _SUB_L and tL % _SUB_L == 0:
        n_sub = tL // _SUB_L

        def body(s, carry):
            off = pl.multiple_of(s * _SUB_L, _SUB_L)
            o_ref[:, pl.ds(off, _SUB_L)] = x_ref[pl.ds(off, _SUB_L), :].T
            return carry

        lax.fori_loop(0, n_sub, body, 0, unroll=(n_sub <= 8))
    else:
        o_ref[...] = x_ref[...].T
    # TODO(synk): if bundle dumps show vxpose binding on v7x for 16-bit dtypes,
    # add a bf16 pack-to-u32 (pltpu.bitcast) transpose path.


@functools.lru_cache(maxsize=1)
def _hw_budgets():
    """(tile_byte_cap, vmem_limit_bytes), sized per TPU generation."""
    vmem_cap = 0
    try:
        info = pltpu.get_tpu_info()
        vmem_cap = int(getattr(info, "vmem_capacity_bytes", 0) or 0)
    except Exception:
        vmem_cap = 0
    if vmem_cap <= 0:
        vmem_cap = 64 * 1024 * 1024          # unknown: assume v7x-class (smallest)
    if vmem_cap <= 64 * 1024 * 1024:
        # v7x: 64 MiB physical shared by 2 TensorCores -> modest per-core footprint.
        return 4 * 1024 * 1024, 28 * 1024 * 1024
    # v5e / v6e: 128 MiB physical, single TensorCore -> bigger tiles, fewer steps.
    return 8 * 1024 * 1024, 64 * 1024 * 1024


def _divisor_tile(dim, max_elems):
    """Largest multiple of 128 that divides `dim` and is <= max_elems (0 if none)."""
    if dim % 128 != 0 or max_elems < 128:
        return 0
    best = 0
    t = 128
    limit = min(dim, max_elems)
    while t <= limit:
        if dim % t == 0:
            best = t
        t += 128
    return best


def _plan_tiles(L, C, itemsize, tile_cap_bytes):
    """Pick (tL, tC): prefer tC == C (fully contiguous input slab per step) and a
    dtype-scaled tL so every strided output-write row is >= 2 KiB."""
    cap_elems = max(tile_cap_bytes // itemsize, 1)
    row_target = max(512, 2048 // itemsize)          # elems per contiguous output row

    # Path A: full-C slab per step.
    if C <= cap_elems:
        max_tL = cap_elems // C
        tL = _divisor_tile(L, max_tL)
        if tL == 0 and L <= max_tL:
            tL = L                                   # full-extent (ragged L) block
        if tL > 0:
            return tL, C

    # Path B: tile both axes (C alone does not fit the budget).
    tL_budget = min(max(row_target, int(cap_elems ** 0.5)), cap_elems // 128)
    tL = _divisor_tile(L, tL_budget)
    if tL == 0 and L * 128 <= cap_elems:
        tL = L
    if tL == 0:
        return None
    tC = _divisor_tile(C, cap_elems // tL)
    if tC == 0 and C * tL <= cap_elems:
        tC = C
    if tC == 0:
        return None
    tL2 = _divisor_tile(L, cap_elems // tC)          # re-grow tL within the cap
    if tL2 > tL:
        tL = tL2
    return tL, tC


def _run(x, tL, tC, vmem_limit, in_buffers):
    B, L, C = x.shape
    itemsize = jnp.dtype(x.dtype).itemsize
    total_bytes = B * L * C * itemsize

    in_block = (None, tL, tC)          # batch dim squeezed -> pure 2-D transpose in-kernel
    out_block = (None, tC, tL)
    in_map = lambda b, i, j: (b, i, j)
    out_map = lambda b, i, j: (b, j, i)

    if in_buffers > 2:
        try:
            in_spec = pl.BlockSpec(in_block, in_map,
                                   pipeline_mode=pl.Buffered(in_buffers))
        except (TypeError, AttributeError):
            in_spec = pl.BlockSpec(in_block, in_map)
    else:
        in_spec = pl.BlockSpec(in_block, in_map)

    return pl.pallas_call(
        _transpose_kernel,
        out_shape=jax.ShapeDtypeStruct((B, C, L), x.dtype),
        grid_spec=pltpu.PrefetchScalarGridSpec(
            num_scalar_prefetch=0,
            # B leads (splits cleanly across v7x's 2 TensorCores); with B == 1
            # the L-tile axis (usually the largest) is next in line to shard.
            grid=(B, L // tL, C // tC),
            in_specs=[in_spec],
            out_specs=pl.BlockSpec(out_block, out_map),
        ),
        compiler_params=pltpu.CompilerParams(
            # Every grid point writes a distinct output tile -> no reduction
            # axis, all axes may shard across cores.
            dimension_semantics=("parallel", "parallel", "parallel"),
            vmem_limit_bytes=vmem_limit,
        ),
        cost_estimate=pl.CostEstimate(
            flops=0, transcendentals=0, bytes_accessed=2 * total_bytes),
    )(x)


def _launch(x, tL, tC, vmem_limit):
    itemsize = jnp.dtype(x.dtype).itemsize
    tile_bytes = tL * tC * itemsize
    # 3-deep input buffering hides output-writeback jitter; only when the extra
    # buffer (3 in + 2 out tiles + headroom) comfortably fits the scoped limit.
    if 5 * tile_bytes + (2 << 20) <= vmem_limit:
        try:
            return _run(x, tL, tC, vmem_limit, 3)
        except Exception:
            pass
    return _run(x, tL, tC, vmem_limit, 2)


def pallas_transpose(x, dim0=1, dim1=2, *, _tile_cap_bytes=None):
    """JAX/Pallas equivalent of Transpose(dim0, dim1[, contiguous=True]).

    The 3-D (1, 2) swap used by HybridPatchAutoformer runs through the tiled
    Pallas kernel; every other case falls back to jnp.swapaxes (identical
    semantics; `.contiguous()` is a no-op notion in JAX).
    """
    nd = x.ndim
    if nd != 3 or {dim0 % nd, dim1 % nd} != {1, 2}:
        # TODO(synk): only the 3-D (1, 2) swap has a Pallas hot path.
        return jnp.swapaxes(x, dim0, dim1)

    B, L, C = x.shape
    itemsize = jnp.dtype(x.dtype).itemsize
    total_bytes = B * L * C * itemsize
    if total_bytes < _SMALL_BYTES:
        # Tiny tensors: fixed pallas_call / per-step overhead dominates.
        return jnp.swapaxes(x, 1, 2)

    tile_cap, vmem_limit = _hw_budgets()
    if _tile_cap_bytes is not None:          # test hook
        tile_cap = _tile_cap_bytes

    plan = _plan_tiles(L, C, itemsize, tile_cap)
    if plan is not None:
        return _launch(x, plan[0], plan[1], vmem_limit)

    # Large ragged shapes: pad up to lane-dense multiples of 128 (avoids masked
    # vst.msk partial stores), transpose, then slice the true extent back out.
    Lp = -(-L // 128) * 128
    Cp = -(-C // 128) * 128
    plan_p = _plan_tiles(Lp, Cp, itemsize, tile_cap)
    if plan_p is not None and (Lp * Cp) / (L * C) <= _MAX_PAD_RATIO:
        xp = jnp.pad(x, ((0, 0), (0, Lp - L), (0, Cp - C)))
        yp = _launch(xp, plan_p[0], plan_p[1], vmem_limit)
        return yp[:, :C, :L]

    # TODO(synk): an in-kernel masked ragged path would avoid both the extra
    # pad/slice passes and XLA's generic transpose for this (rare) branch.
    return jnp.swapaxes(x, 1, 2)


if __name__ == "__main__":
    key = jax.random.PRNGKey(0)
    k0, k1, k2, k3, k4 = jax.random.split(key, 5)

    # 1) Small shape matching the module's typical toy use (XLA fast path).
    x0 = jax.random.normal(k0, (2, 8, 32), dtype=jnp.float32)
    y0 = jax.block_until_ready(pallas_transpose(x0, 1, 2))
    assert y0.shape == (2, 32, 8) and y0.dtype == x0.dtype
    assert jnp.array_equal(y0, jnp.swapaxes(x0, 1, 2))

    # 2) Pallas tiled path: full-C slab blocks + in-kernel sub-blocking (tL=512).
    x1 = jax.random.normal(k1, (2, 512, 256), dtype=jnp.float32)
    y1 = jax.block_until_ready(pallas_transpose(x1, 1, 2))
    assert y1.shape == (2, 256, 512)
    assert jnp.array_equal(y1, jnp.swapaxes(x1, 1, 2))

    # 3) Ragged dims small enough for full-extent blocks (no padding needed).
    x2 = jax.random.normal(k2, (2, 300, 200), dtype=jnp.float32)
    y2 = jax.block_until_ready(pallas_transpose(x2, 1, 2))
    assert y2.shape == (2, 200, 300)
    assert jnp.array_equal(y2, jnp.swapaxes(x2, 1, 2))

    # 4) Padded lane-dense path for "large" ragged shapes (tile cap shrunk so a
    #    small deterministic tensor exercises it).
    x3 = jax.random.normal(k3, (2, 500, 250), dtype=jnp.float32)
    y3 = jax.block_until_ready(
        pallas_transpose(x3, 1, 2, _tile_cap_bytes=128 * 1024))
    assert y3.shape == (2, 250, 500)
    assert jnp.array_equal(y3, jnp.swapaxes(x3, 1, 2))

    # 5) Both-axes tiling (Path B) with a multi-tile grid exercising the
    #    transposed output index_map (again via a shrunken tile cap).
    x4 = jax.random.normal(k4, (2, 512, 512), dtype=jnp.float32)
    y4 = jax.block_until_ready(
        pallas_transpose(x4, 1, 2, _tile_cap_bytes=128 * 1024))
    assert y4.shape == (2, 512, 512)
    assert jnp.array_equal(y4, jnp.swapaxes(x4, 1, 2))

    print("KERNEL_OK")
</pallas_src>

<mosaic_0001>
module attributes {stable_mosaic.version = 11 : i64} {
  func.func @_transpose_kernel(%arg0: i32, %arg1: i32, %arg2: i32, %arg3: memref<1x512x256xf32, #tpu.memory_space<vmem>>, %arg4: memref<1x256x512xf32, #tpu.memory_space<vmem>>) attributes {dimension_semantics = [#tpu.dimension_semantics<parallel>, #tpu.dimension_semantics<parallel>, #tpu.dimension_semantics<parallel>], iteration_bounds = array<i64: 2, 1, 1>, scalar_prefetch = 0 : i64, scratch_operands = 0 : i64, tpu.core_type = #tpu.core_type<tc>, window_params = [{transform_indices = @transform_0, window_bounds = array<i64: 1, 512, 256>}, {transform_indices = @transform_1, window_bounds = array<i64: 1, 256, 512>}]} {
    %c0_i32 = arith.constant 0 : i32
    %c256_i32 = arith.constant 256 : i32
    %0 = arith.muli %c0_i32, %c256_i32 : i32
    %1 = tpu.assume_multiple %0, 256 : i32
    %c0 = arith.constant 0 : index
    %2 = arith.index_cast %1 : i32 to index
    %c0_0 = arith.constant 0 : index
    %3 = vector.load %arg3[%c0, %2, %c0_0] : memref<1x512x256xf32, #tpu.memory_space<vmem>>, vector<1x256x256xf32>
    %4 = vector.shape_cast %3 : vector<1x256x256xf32> to vector<256x256xf32>
    %5 = tpu.transpose %4, [1, 0] : vector<256x256xf32> -> vector<256x256xf32>
    %c0_1 = arith.constant 0 : index
    %c0_2 = arith.constant 0 : index
    %6 = arith.index_cast %1 : i32 to index
    %7 = vector.load %arg4[%c0_1, %c0_2, %6] : memref<1x256x512xf32, #tpu.memory_space<vmem>>, vector<1x256x256xf32>
    %8 = vector.shape_cast %7 : vector<1x256x256xf32> to vector<256x256xf32>
    %9 = vector.shape_cast %5 : vector<256x256xf32> to vector<1x256x256xf32>
    tpu.vector_store %arg4[%c0_1, %c0_2, %6], %9 {strides = array<i32>} : memref<1x256x512xf32, #tpu.memory_space<vmem>>, vector<1x256x256xf32>,
    %c1_i32 = arith.constant 1 : i32
    %c256_i32_3 = arith.constant 256 : i32
    %10 = arith.muli %c1_i32, %c256_i32_3 : i32
    %11 = tpu.assume_multiple %10, 256 : i32
    %c0_4 = arith.constant 0 : index
    %12 = arith.index_cast %11 : i32 to index
    %c0_5 = arith.constant 0 : index
    %13 = vector.load %arg3[%c0_4, %12, %c0_5] : memref<1x512x256xf32, #tpu.memory_space<vmem>>, vector<1x256x256xf32>
    %14 = vector.shape_cast %13 : vector<1x256x256xf32> to vector<256x256xf32>
    %15 = tpu.transpose %14, [1, 0] : vector<256x256xf32> -> vector<256x256xf32>
    %c0_6 = arith.constant 0 : index
    %c0_7 = arith.constant 0 : index
    %16 = arith.index_cast %11 : i32 to index
    %17 = vector.load %arg4[%c0_6, %c0_7, %16] : memref<1x256x512xf32, #tpu.memory_space<vmem>>, vector<1x256x256xf32>
    %18 = vector.shape_cast %17 : vector<1x256x256xf32> to vector<256x256xf32>
    %19 = vector.shape_cast %15 : vector<256x256xf32> to vector<1x256x256xf32>
    tpu.vector_store %arg4[%c0_6, %c0_7, %16], %19 {strides = array<i32>} : memref<1x256x512xf32, #tpu.memory_space<vmem>>, vector<1x256x256xf32>,
    %c2_i32 = arith.constant 2 : i32
    return
  }
  func.func @transform_0(%arg0: i32, %arg1: i32, %arg2: i32) -> (i32, i32, i32) {
    %c0_i32 = arith.constant 0 : i32
    return %arg0, %arg1, %arg2 : i32, i32, i32
  }
  func.func @transform_1(%arg0: i32, %arg1: i32, %arg2: i32) -> (i32, i32, i32) {
    %c0_i32 = arith.constant 0 : i32
    return %arg0, %arg2, %arg1 : i32, i32, i32
  }
}

</mosaic_0001>

<bundles_post_ra>
// kernel: tpu_custom_call.1
= control target key start
LH: loop header
LB: loop body
LE: loop exit
PB: predicated region body
PF: predicated region fallthrough
CT: control target
= control target key end

     0   :  { %6 = vsyncpa [#allocation3], 0  ;;  %s1585_s0 = inlined_call_operand.hbm [shape: f32[2,512,256], index: 0, kind: input, shape index: {}]   ;;  %s1586_s1 = inlined_call_operand.hbm [shape: f32[2,256,512], index: 1, kind: output, shape index: {}]  }
   0x1   :  { %8 = vsyncpa [#allocation3 + $0x1], 0 }
   0x2   :  { %9 = vsyncpa [#allocation4], 0 }
   0x3   :  { %11 = vsyncpa [#allocation4 + $0x1], 0  ;;  %s1145_s6 = smov 0   ;;  %s1147_s7 = smov 0  }
   0x4   :  { %s1149_s8 = smov 0   ;;  %s1151_s9 = smov 0  }
   0x5   :  { %s1153_s10 = smov 0   ;;  %s1155_s11 = smov 0  }
   0x6 LB: > { %s804_s12 = sadd.s32 4294967295, %s1127_s11   ;;  %s805_s13 = sadd.s32 4294967294, %s1127_s11   ;;  %s1127_s11 = sphi %s1155_s11, %s17_s11   ;;  %s1123_s10 = sphi %s1153_s10, %s1601_s10   ;;  %s1119_s9 = sphi %s1151_s9, %s1600_s9   ;;  %s1115_s8 = sphi %s1149_s8, %s1599_s8   ;;  %s1111_s7 = sphi %s1147_s7, %s1598_s7   ;;  %s1107_s6 = sphi %s1145_s6, %s1597_s6  }
   0x7   : > { %s36_s14 = sadd.s32 1, %s1123_s10  ;;  %s47_s15 = sadd.s32 1, %s1115_s8 }
   0x8   : > { %p38_p0 = scmp.ge.s32.totalorder %s36_s14, 2  ;;  %p54_p1 = scmp.ne.s32.totalorder %s1115_s8, %s1111_s7 }
   0x9   : > { %p55_p2 = scmp.eq.s32.totalorder %s1127_s11, 0  ;;  %p60_p3 = scmp.ne.s32.totalorder %s1111_s7, %s1107_s6 }
   0xa   : > { %s1603_s14 = smov (%p38_p0, %s36_s14), 0  ;;  %p61_p5 = scmp.eq.s32.totalorder %s804_s12, 0 }
   0xb   : > { %p1186_p4 = por %p55_p2, %p54_p1  ;;  %s40_s17 = ssub.s32 %s1123_s10, %s1603_s14 }
   0xc   : > { %p88_p6 = scmp.eq.s32.totalorder %s804_s12, 1  ;;  %p45_p7 = scmp.eq.s32.totalorder %s40_s17, 0 }
   0xd   : > { %p1192_p8 = por %p61_p5, %p60_p3  ;;  %p94_p10 = scmp.eq.s32.totalorder %s805_s13, 1 }
   0xe   : > { %p1196_p9 = por %p88_p6, %p54_p1  ;;  %p961_p13 = scmp.lt.s32.totalorder %s1127_s11, 2 }
   0xf   : > { %s1201_s20 = scalar_select %p45_p7, %s1115_s8, %s47_s15  }
  0x10   : > { %s1590_s19 = scalar_select %p1196_p9, 1, 0 }
  0x11   : > { %p1203_p11 = por %p94_p10, %p60_p3  ;;  %s114_s22 = sand.u32 1, %s1115_s8  }
  0x12   : > { %s808_s23 = sshll.u32 %s114_s22, 10  ;;  %s947_s24 = sshll.u32 %s1123_s10, 14 }
  0x13   : > { %s1591_s21 = scalar_select %p1203_p11, 1, 0 }
  0x14   : > { %s1214_s27 = scalar_lea.hbm %s1585_s0, %s947_s24  ;;  %s118_s28 = scalar_lea.vmem [#allocation2], %s808_s23 }
  0x15   : > { %s130_s29 = sshll.u32 %s118_s28, 4  ;;  %p1220_p0 = pnand %p961_p13, %p1186_p4  ;;  %s1216_s29 = int_to_ptr.vmem [resolvable:$true] %s130_s29 }
  0x16   : > { %s1225_s2 = scalar_lea.sflag [#allocation3], %s114_s22  ;;  %s1015_s3 = scalar_lea.hbm %s1214_s27, 16384 }
  0x17   : > { %p1016_p2 = scmp.ne.s32.totalorder %s1214_s27, %s1015_s3  ;;  %p1017_p3 = pneg %p1220_p0 }
  0x18   : > { %s1020_s12 = scalar_lea.hbm %s1585_s0, 32768  ;;  %p1021_p4 = scmp.lt.u32.totalorder %s1214_s27, %s1585_s0 }
  0x19   : > { %p1018_p5 = pnand %p1017_p3, %p1016_p2  ;;  %p1022_p7 = scmp.lt.u32.totalorder %s1020_s12, %s1015_s3 }
  0x1a   : > { %p1024_p13 = scmp.lt.u32.totalorder %s1015_s3, %s1214_s27 }
  0x1b   : > { %p1019_p6 = pneg %p1018_p5  ;;  %p1023_p10 = por %p1022_p7, %p1021_p4 }
  0x1d   : > { %p1025_p12 = por %p1024_p13, %p1023_p10 }
  0x1f   : > { %p1026_p1 = pnand %p1025_p12, %p1019_p6 }
  0x21   : > { %1029 = shalt.err (!%p1026_p1)
}
  0x22   : > { %s1030_s16 = scalar_lea.vmem %s1216_s29, 16384  ;;  %s1129_s17 = smov [#allocation2]  }
  0x23   : > { %p1031_p2 = scmp.ne.s32.totalorder %s1216_s29, %s1030_s16  ;;  %s1035_s22 = sshll.u32 %s1129_s17, 4  ;;  %s1036_s22 = int_to_ptr.vmem [resolvable:$false] %s1035_s22 }
  0x24   : > { %s1037_s23 = scalar_lea.vmem %s1036_s22, 32768  ;;  %p1038_p9 = scmp.lt.s32.totalorder %s1216_s29, %s1036_s22 }
  0x25   : > { %p1033_p5 = pnand %p1031_p2, %p1017_p3  ;;  %p1039_p4 = scmp.lt.s32.totalorder %s1037_s23, %s1030_s16 }
  0x27   : > { %p1034_p11 = pneg %p1033_p5  ;;  %p1040_p7 = por %p1039_p4, %p1038_p9 }
  0x29   : > { %p1041_p10 = pnand %p1040_p7, %p1034_p11 }
  0x2b   : > { %1044 = shalt.err (!%p1041_p10)
}
  0x2c   : > { %s1130_s24 = smov 256   ;;  %s1131_s25 = smov 16  }
  0x2d   : > { %956 = dma.hbm_to_vmem [thread:$0]  (!%p1220_p0), %s1214_s27, 16384, %s1216_s29, %s1225_s2, %s1130_s24, %s1130_s24, %s1131_s25  }
  0x2e   : > { %p138_p12 = scmp.lt.s32.totalorder %s1127_s11, 3  ;;  %p1593_p1 = scmp.ge.s32.totalorder %s1127_s11, 1 }
  0x30   : > { %p139_p3 = pnand %p1593_p1, %p138_p12 }
  0x31   : > { %s1257_s26 = sand.u32 (!%p139_p3), 1, %s1111_s7  }
  0x32   : > { %142 = sbr.rel (%p139_p3) target bundleno = 455 (0x1c7), region = 24  ;;  %s812_s28 = sshll.u32 (!%p139_p3), %s1257_s26, 10 }
  0x33   : > { %s145_s3 = scalar_lea.sflag (!%p139_p3), [#allocation3], %s1257_s26  ;;  %s1263_s4 = scalar_lea.vmem (!%p139_p3), [#allocation2], %s812_s28 }
  0x39   : > { %1098 = dma.done.wait (%p1192_p8), %s145_s3, 16384  }
  0x3a   : > { %1100 = vsyncadd (%p1192_p8), %s145_s3, 4294950912  ;;  %v175_v0 = vld [vmem:[%s1263_s4 + $0x8] sm:$0xff]  ;;  %v174_v1 = vld [vmem:[%s1263_s4] sm:$0xff]  ;;  %s1337_s18 = scalar_lea.vmem [#allocation5], %s812_s28  ;;  %s948_s27 = sshll.u32 %s1119_s9, 14 }
  0x3b   : > { %270 = vxpose.xlu1.b32.start [1/16] %v175_v0, 128  ;;  %238 = vxpose.xlu0.b32.start [1/16] %v174_v1, 128  ;;  %v177_v2 = vld [vmem:[%s1263_s4 + $0x18] sm:$0xff]  ;;  %v176_v3 = vld [vmem:[%s1263_s4 + $0x10] sm:$0xff]  ;;  %v179_v4 = vld [vmem:[%s1263_s4 + $0x28] sm:$0xff]  ;;  %s709_s29 = sshll.u32 %s1337_s18, 4  ;;  %s1532_s5 = scalar_lea.hbm %s1586_s1, %s948_s27  ;;  %s1534_s29 = int_to_ptr.vmem [resolvable:$true] %s709_s29 }
  0x3c   : > { %v178_v5 = vld [vmem:[%s1263_s4 + $0x20] sm:$0xff]  ;;  %v181_v6 = vld [vmem:[%s1263_s4 + $0x38] sm:$0xff]  ;;  %v180_v7 = vld [vmem:[%s1263_s4 + $0x30] sm:$0xff]  ;;  %s691_s9 = scalar_lea.sflag [#allocation4], %s1257_s26  ;;  %s1045_s12 = scalar_lea.vmem %s1534_s29, 16384 }
  0x3d   : > { %v183_v8 = vld [vmem:[%s1263_s4 + $0x48] sm:$0xff]  ;;  %v182_v9 = vld [vmem:[%s1263_s4 + $0x40] sm:$0xff]  ;;  %v185_v10 = vld [vmem:[%s1263_s4 + $0x58] sm:$0xff]  ;;  %p1046_p8 = scmp.ne.s32.totalorder %s1534_s29, %s1045_s12  ;;  %p1594_p9 = scmp.ne.s32.totalorder %s1590_s19, 0 }
  0x3e   : > { %v184_v11 = vld [vmem:[%s1263_s4 + $0x50] sm:$0xff]  ;;  %v187_v12 = vld [vmem:[%s1263_s4 + $0x68] sm:$0xff]  ;;  %v186_v13 = vld [vmem:[%s1263_s4 + $0x60] sm:$0xff]  ;;  %s1132_s13 = smov [#allocation5]  }
  0x3f   : > { %271 = vxpose.xlu1.b32.cont [2/16] %v177_v2, 128  ;;  %239 = vxpose.xlu0.b32.cont [2/16] %v176_v3, 128  ;;  %v189_v14 = vld [vmem:[%s1263_s4 + $0x78] sm:$0xff]  ;;  %v188_v15 = vld [vmem:[%s1263_s4 + $0x70] sm:$0xff]  ;;  %v191_v16 = vld [vmem:[%s1263_s4 + $0x88] sm:$0xff]  ;;  %p1047_p11 = pnand %p1046_p8, %p1594_p9  ;;  %s1049_s15 = sshll.u32 %s1132_s13, 4  ;;  %s1050_s15 = int_to_ptr.vmem [resolvable:$false] %s1049_s15 }
  0x40   : > { %v190_v17 = vld [vmem:[%s1263_s4 + $0x80] sm:$0xff]  ;;  %v193_v18 = vld [vmem:[%s1263_s4 + $0x98] sm:$0xff]  ;;  %v192_v19 = vld [vmem:[%s1263_s4 + $0x90] sm:$0xff]  ;;  %s1051_s16 = scalar_lea.vmem %s1050_s15, 32768  ;;  %p1052_p6 = scmp.lt.s32.totalorder %s1534_s29, %s1050_s15 }
  0x41   : > { %v195_v20 = vld [vmem:[%s1263_s4 + $0xa8] sm:$0xff]  ;;  %v194_v21 = vld [vmem:[%s1263_s4 + $0xa0] sm:$0xff]  ;;  %v197_v22 = vld [vmem:[%s1263_s4 + $0xb8] sm:$0xff]  ;;  %p1048_p0 = pneg %p1047_p11  ;;  %p1053_p13 = scmp.lt.s32.totalorder %s1051_s16, %s1045_s12 }
  0x42   : > { %v196_v23 = vld [vmem:[%s1263_s4 + $0xb0] sm:$0xff]  ;;  %v199_v24 = vld [vmem:[%s1263_s4 + $0xc8] sm:$0xff]  ;;  %v198_v25 = vld [vmem:[%s1263_s4 + $0xc0] sm:$0xff] }
  0x43   : > { %272 = vxpose.xlu1.b32.cont [3/16] %v179_v4, 128  ;;  %240 = vxpose.xlu0.b32.cont [3/16] %v178_v5, 128  ;;  %v201_v26 = vld [vmem:[%s1263_s4 + $0xd8] sm:$0xff]  ;;  %v200_v27 = vld [vmem:[%s1263_s4 + $0xd0] sm:$0xff]  ;;  %v203_v28 = vld [vmem:[%s1263_s4 + $0xe8] sm:$0xff]  ;;  %p1054_p2 = por %p1053_p13, %p1052_p6 }
  0x44   : > { %v202_v29 = vld [vmem:[%s1263_s4 + $0xe0] sm:$0xff]  ;;  %v205_v30 = vld [vmem:[%s1263_s4 + $0xf8] sm:$0xff]  ;;  %v204_v31 = vld [vmem:[%s1263_s4 + $0xf0] sm:$0xff] }
  0x45   : > { %v207_v32 = vld [vmem:[%s1263_s4 + $0x108] sm:$0xff]  ;;  %v206_v33 = vld [vmem:[%s1263_s4 + $0x100] sm:$0xff]  ;;  %v209_v34 = vld [vmem:[%s1263_s4 + $0x118] sm:$0xff]  ;;  %p1055_p5 = pnand %p1054_p2, %p1048_p0 }
  0x46   : > { %v208_v35 = vld [vmem:[%s1263_s4 + $0x110] sm:$0xff]  ;;  %v211_v36 = vld [vmem:[%s1263_s4 + $0x128] sm:$0xff]  ;;  %v210_v37 = vld [vmem:[%s1263_s4 + $0x120] sm:$0xff] }
  0x47   : > { %273 = vxpose.xlu1.b32.cont [4/16] %v181_v6, 128  ;;  %241 = vxpose.xlu0.b32.cont [4/16] %v180_v7, 128  ;;  %v213_v38 = vld [vmem:[%s1263_s4 + $0x138] sm:$0xff]  ;;  %v212_v39 = vld [vmem:[%s1263_s4 + $0x130] sm:$0xff]  ;;  %v215_v40 = vld [vmem:[%s1263_s4 + $0x148] sm:$0xff] }
  0x48   : > { %v214_v41 = vld [vmem:[%s1263_s4 + $0x140] sm:$0xff]  ;;  %v217_v42 = vld [vmem:[%s1263_s4 + $0x158] sm:$0xff]  ;;  %v216_v43 = vld [vmem:[%s1263_s4 + $0x150] sm:$0xff] }
  0x49   : > { %v219_v44 = vld [vmem:[%s1263_s4 + $0x168] sm:$0xff]  ;;  %v218_v45 = vld [vmem:[%s1263_s4 + $0x160] sm:$0xff]  ;;  %v221_v46 = vld [vmem:[%s1263_s4 + $0x178] sm:$0xff] }
  0x4a   : > { %v220_v47 = vld [vmem:[%s1263_s4 + $0x170] sm:$0xff]  ;;  %v223_v48 = vld [vmem:[%s1263_s4 + $0x188] sm:$0xff]  ;;  %v222_v49 = vld [vmem:[%s1263_s4 + $0x180] sm:$0xff] }
  0x4b   : > { %274 = vxpose.xlu1.b32.cont [5/16] %v183_v8, 128  ;;  %242 = vxpose.xlu0.b32.cont [5/16] %v182_v9, 128  ;;  %v225_v50 = vld [vmem:[%s1263_s4 + $0x198] sm:$0xff]  ;;  %v224_v51 = vld [vmem:[%s1263_s4 + $0x190] sm:$0xff]  ;;  %v227_v52 = vld [vmem:[%s1263_s4 + $0x1a8] sm:$0xff] }
  0x4c   : > { %v226_v53 = vld [vmem:[%s1263_s4 + $0x1a0] sm:$0xff]  ;;  %v229_v54 = vld [vmem:[%s1263_s4 + $0x1b8] sm:$0xff]  ;;  %v228_v55 = vld [vmem:[%s1263_s4 + $0x1b0] sm:$0xff] }
  0x4d   : > { %v231_v56 = vld [vmem:[%s1263_s4 + $0x1c8] sm:$0xff]  ;;  %v230_v57 = vld [vmem:[%s1263_s4 + $0x1c0] sm:$0xff]  ;;  %v233_v58 = vld [vmem:[%s1263_s4 + $0x1d8] sm:$0xff] }
  0x4e   : > { %v232_v59 = vld [vmem:[%s1263_s4 + $0x1d0] sm:$0xff]  ;;  %v235_v60 = vld [vmem:[%s1263_s4 + $0x1e8] sm:$0xff]  ;;  %v234_v61 = vld [vmem:[%s1263_s4 + $0x1e0] sm:$0xff] }
  0x4f   : > { %275 = vxpose.xlu1.b32.cont [6/16] %v185_v10, 128  ;;  %243 = vxpose.xlu0.b32.cont [6/16] %v184_v11, 128  ;;  %v237_v62 = vld [vmem:[%s1263_s4 + $0x1f8] sm:$0xff]  ;;  %v236_v63 = vld [vmem:[%s1263_s4 + $0x1f0] sm:$0xff]  ;;  %v815_v0 = vld [vmem:[%s1263_s4 + $0x208] sm:$0xff] }
  0x50   : > { %v814_v1 = vld [vmem:[%s1263_s4 + $0x200] sm:$0xff]  ;;  %v817_v4 = vld [vmem:[%s1263_s4 + $0x218] sm:$0xff]  ;;  %v816_v5 = vld [vmem:[%s1263_s4 + $0x210] sm:$0xff] }
  0x51   : > { %v819_v8 = vld [vmem:[%s1263_s4 + $0x228] sm:$0xff]  ;;  %v818_v9 = vld [vmem:[%s1263_s4 + $0x220] sm:$0xff] }
  0x53   : > { %276 = vxpose.xlu1.b32.cont [7/16] %v187_v12, 128  ;;  %244 = vxpose.xlu0.b32.cont [7/16] %v186_v13, 128  ;;  %v821_v12 = vld [vmem:[%s1263_s4 + $0x238] sm:$0xff]  ;;  %v820_v13 = vld [vmem:[%s1263_s4 + $0x230] sm:$0xff] }
  0x57   : > { %277 = vxpose.xlu1.b32.cont [8/16] %v189_v14, 128  ;;  %245 = vxpose.xlu0.b32.cont [8/16] %v188_v15, 128 }
  0x5b   : > { %278 = vxpose.xlu1.b32.cont [9/16] %v191_v16, 128  ;;  %246 = vxpose.xlu0.b32.cont [9/16] %v190_v17, 128  ;;  %v823_v16 = vld [vmem:[%s1263_s4 + $0x248] sm:$0xff]  ;;  %v822_v17 = vld [vmem:[%s1263_s4 + $0x240] sm:$0xff] }
  0x5f   : > { %279 = vxpose.xlu1.b32.cont [10/16] %v193_v18, 128  ;;  %247 = vxpose.xlu0.b32.cont [10/16] %v192_v19, 128 }
  0x63   : > { %280 = vxpose.xlu1.b32.cont [11/16] %v195_v20, 128  ;;  %248 = vxpose.xlu0.b32.cont [11/16] %v194_v21, 128  ;;  %v825_v20 = vld [vmem:[%s1263_s4 + $0x258] sm:$0xff]  ;;  %v824_v21 = vld [vmem:[%s1263_s4 + $0x250] sm:$0xff] }
  0x67   : > { %281 = vxpose.xlu1.b32.cont [12/16] %v197_v22, 128  ;;  %249 = vxpose.xlu0.b32.cont [12/16] %v196_v23, 128 }
  0x6b   : > { %282 = vxpose.xlu1.b32.cont [13/16] %v199_v24, 128  ;;  %250 = vxpose.xlu0.b32.cont [13/16] %v198_v25, 128  ;;  %v827_v24 = vld [vmem:[%s1263_s4 + $0x268] sm:$0xff]  ;;  %v826_v25 = vld [vmem:[%s1263_s4 + $0x260] sm:$0xff] }
  0x6f   : > { %283 = vxpose.xlu1.b32.cont [14/16] %v201_v26, 128  ;;  %251 = vxpose.xlu0.b32.cont [14/16] %v200_v27, 128 }
  0x73   : > { %284 = vxpose.xlu1.b32.cont [15/16] %v203_v28, 128  ;;  %252 = vxpose.xlu0.b32.cont [15/16] %v202_v29, 128  ;;  %v829_v28 = vld [vmem:[%s1263_s4 + $0x278] sm:$0xff]  ;;  %v828_v29 = vld [vmem:[%s1263_s4 + $0x270] sm:$0xff] }
  0x77   : > { %285 = vxpose.xlu1.b32.end [16/16] %v205_v30, 128  ;;  %253 = vxpose.xlu0.b32.end [16/16] %v204_v31, 128 }
  0x7b   : > { %334 = vxpose.xlu1.b32.start [1/16] %v207_v32, 128  ;;  %302 = vxpose.xlu0.b32.start [1/16] %v206_v33, 128  ;;  %v831_v32 = vld [vmem:[%s1263_s4 + $0x288] sm:$0xff]  ;;  %v830_v33 = vld [vmem:[%s1263_s4 + $0x280] sm:$0xff] }
  0x7f   : > { %335 = vxpose.xlu1.b32.cont [2/16] %v209_v34, 128  ;;  %303 = vxpose.xlu0.b32.cont [2/16] %v208_v35, 128 }
  0x83   : > { %336 = vxpose.xlu1.b32.cont [3/16] %v211_v36, 128  ;;  %304 = vxpose.xlu0.b32.cont [3/16] %v210_v37, 128  ;;  %v833_v36 = vld [vmem:[%s1263_s4 + $0x298] sm:$0xff]  ;;  %v832_v37 = vld [vmem:[%s1263_s4 + $0x290] sm:$0xff] }
  0x87   : > { %337 = vxpose.xlu1.b32.cont [4/16] %v213_v38, 128  ;;  %305 = vxpose.xlu0.b32.cont [4/16] %v212_v39, 128 }
  0x8b   : > { %338 = vxpose.xlu1.b32.cont [5/16] %v215_v40, 128  ;;  %306 = vxpose.xlu0.b32.cont [5/16] %v214_v41, 128  ;;  %v835_v40 = vld [vmem:[%s1263_s4 + $0x2a8] sm:$0xff]  ;;  %v834_v41 = vld [vmem:[%s1263_s4 + $0x2a0] sm:$0xff] }
  0x8f   : > { %339 = vxpose.xlu1.b32.cont [6/16] %v217_v42, 128  ;;  %307 = vxpose.xlu0.b32.cont [6/16] %v216_v43, 128 }
  0x93   : > { %340 = vxpose.xlu1.b32.cont [7/16] %v219_v44, 128  ;;  %308 = vxpose.xlu0.b32.cont [7/16] %v218_v45, 128  ;;  %v837_v44 = vld [vmem:[%s1263_s4 + $0x2b8] sm:$0xff]  ;;  %v836_v45 = vld [vmem:[%s1263_s4 + $0x2b0] sm:$0xff] }
  0x97   : > { %341 = vxpose.xlu1.b32.cont [8/16] %v221_v46, 128  ;;  %309 = vxpose.xlu0.b32.cont [8/16] %v220_v47, 128 }
  0x9b   : > { %342 = vxpose.xlu1.b32.cont [9/16] %v223_v48, 128  ;;  %310 = vxpose.xlu0.b32.cont [9/16] %v222_v49, 128  ;;  %v839_v48 = vld [vmem:[%s1263_s4 + $0x2c8] sm:$0xff]  ;;  %v838_v49 = vld [vmem:[%s1263_s4 + $0x2c0] sm:$0xff] }
  0x9f   : > { %343 = vxpose.xlu1.b32.cont [10/16] %v225_v50, 128  ;;  %311 = vxpose.xlu0.b32.cont [10/16] %v224_v51, 128 }
  0xa3   : > { %344 = vxpose.xlu1.b32.cont [11/16] %v227_v52, 128  ;;  %312 = vxpose.xlu0.b32.cont [11/16] %v226_v53, 128  ;;  %v841_v52 = vld [vmem:[%s1263_s4 + $0x2d8] sm:$0xff]  ;;  %v840_v53 = vld [vmem:[%s1263_s4 + $0x2d0] sm:$0xff] }
  0xa7   : > { %345 = vxpose.xlu1.b32.cont [12/16] %v229_v54, 128  ;;  %313 = vxpose.xlu0.b32.cont [12/16] %v228_v55, 128 }
  0xab   : > { %346 = vxpose.xlu1.b32.cont [13/16] %v231_v56, 128  ;;  %314 = vxpose.xlu0.b32.cont [13/16] %v230_v57, 128  ;;  %v843_v56 = vld [vmem:[%s1263_s4 + $0x2e8] sm:$0xff]  ;;  %v842_v57 = vld [vmem:[%s1263_s4 + $0x2e0] sm:$0xff] }
  0xaf   : > { %347 = vxpose.xlu1.b32.cont [14/16] %v233_v58, 128  ;;  %315 = vxpose.xlu0.b32.cont [14/16] %v232_v59, 128 }
  0xb3   : > { %348 = vxpose.xlu1.b32.cont [15/16] %v235_v60, 128  ;;  %316 = vxpose.xlu0.b32.cont [15/16] %v234_v61, 128  ;;  %v845_v60 = vld [vmem:[%s1263_s4 + $0x2f8] sm:$0xff]  ;;  %v844_v61 = vld [vmem:[%s1263_s4 + $0x2f0] sm:$0xff] }
  0xb7   : > { %349 = vxpose.xlu1.b32.end [16/16] %v237_v62, 128  ;;  %317 = vxpose.xlu0.b32.end [16/16] %v236_v63, 128 }
  0xbb   : > { %529 = vxpose.xlu1.b32.start [1/16] %v815_v0, 128  ;;  %v286_v2 = vpop.trf.xlu1  ;;  %497 = vxpose.xlu0.b32.start [1/16] %v814_v1, 128  ;;  %v254_v3 = vpop.trf.xlu0  ;;  %v847_v0 = vld [vmem:[%s1263_s4 + $0x308] sm:$0xff]  ;;  %v846_v1 = vld [vmem:[%s1263_s4 + $0x300] sm:$0xff] }
  0xbc   : > { %398 = vst [vmem:[%s1337_s18 + $0x200] sm:$0xff] %v286_v2  ;;  %366 = vst [vmem:[%s1337_s18] sm:$0xff] %v254_v3 }
  0xbf   : > { %530 = vxpose.xlu1.b32.cont [2/16] %v817_v4, 128  ;;  %v287_v6 = vpop.trf.xlu1  ;;  %498 = vxpose.xlu0.b32.cont [2/16] %v816_v5, 128  ;;  %v255_v7 = vpop.trf.xlu0  ;;  %v849_v4 = vld [vmem:[%s1263_s4 + $0x318] sm:$0xff]  ;;  %v848_v5 = vld [vmem:[%s1263_s4 + $0x310] sm:$0xff] }
  0xc0   : > { %400 = vst [vmem:[%s1337_s18 + $0x220] sm:$0xff] %v287_v6  ;;  %368 = vst [vmem:[%s1337_s18 + $0x20] sm:$0xff] %v255_v7 }
  0xc3   : > { %531 = vxpose.xlu1.b32.cont [3/16] %v819_v8, 128  ;;  %v288_v10 = vpop.trf.xlu1  ;;  %499 = vxpose.xlu0.b32.cont [3/16] %v818_v9, 128  ;;  %v256_v11 = vpop.trf.xlu0  ;;  %v851_v8 = vld [vmem:[%s1263_s4 + $0x328] sm:$0xff]  ;;  %v850_v9 = vld [vmem:[%s1263_s4 + $0x320] sm:$0xff] }
  0xc4   : > { %402 = vst [vmem:[%s1337_s18 + $0x240] sm:$0xff] %v288_v10  ;;  %370 = vst [vmem:[%s1337_s18 + $0x40] sm:$0xff] %v256_v11 }
  0xc7   : > { %532 = vxpose.xlu1.b32.cont [4/16] %v821_v12, 128  ;;  %v289_v14 = vpop.trf.xlu1  ;;  %500 = vxpose.xlu0.b32.cont [4/16] %v820_v13, 128  ;;  %v257_v15 = vpop.trf.xlu0  ;;  %v853_v12 = vld [vmem:[%s1263_s4 + $0x338] sm:$0xff]  ;;  %v852_v13 = vld [vmem:[%s1263_s4 + $0x330] sm:$0xff] }
  0xc8   : > { %404 = vst [vmem:[%s1337_s18 + $0x260] sm:$0xff] %v289_v14  ;;  %372 = vst [vmem:[%s1337_s18 + $0x60] sm:$0xff] %v257_v15 }
  0xcb   : > { %533 = vxpose.xlu1.b32.cont [5/16] %v823_v16, 128  ;;  %v290_v18 = vpop.trf.xlu1  ;;  %501 = vxpose.xlu0.b32.cont [5/16] %v822_v17, 128  ;;  %v258_v19 = vpop.trf.xlu0  ;;  %v855_v16 = vld [vmem:[%s1263_s4 + $0x348] sm:$0xff]  ;;  %v854_v17 = vld [vmem:[%s1263_s4 + $0x340] sm:$0xff] }
  0xcc   : > { %406 = vst [vmem:[%s1337_s18 + $0x280] sm:$0xff] %v290_v18  ;;  %374 = vst [vmem:[%s1337_s18 + $0x80] sm:$0xff] %v258_v19 }
  0xcf   : > { %534 = vxpose.xlu1.b32.cont [6/16] %v825_v20, 128  ;;  %v291_v22 = vpop.trf.xlu1  ;;  %502 = vxpose.xlu0.b32.cont [6/16] %v824_v21, 128  ;;  %v259_v23 = vpop.trf.xlu0  ;;  %v857_v20 = vld [vmem:[%s1263_s4 + $0x358] sm:$0xff]  ;;  %v856_v21 = vld [vmem:[%s1263_s4 + $0x350] sm:$0xff] }
  0xd0   : > { %408 = vst [vmem:[%s1337_s18 + $0x2a0] sm:$0xff] %v291_v22  ;;  %376 = vst [vmem:[%s1337_s18 + $0xa0] sm:$0xff] %v259_v23 }
  0xd3   : > { %535 = vxpose.xlu1.b32.cont [7/16] %v827_v24, 128  ;;  %v292_v26 = vpop.trf.xlu1  ;;  %503 = vxpose.xlu0.b32.cont [7/16] %v826_v25, 128  ;;  %v260_v27 = vpop.trf.xlu0  ;;  %v859_v24 = vld [vmem:[%s1263_s4 + $0x368] sm:$0xff]  ;;  %v858_v25 = vld [vmem:[%s1263_s4 + $0x360] sm:$0xff] }
  0xd4   : > { %410 = vst [vmem:[%s1337_s18 + $0x2c0] sm:$0xff] %v292_v26  ;;  %378 = vst [vmem:[%s1337_s18 + $0xc0] sm:$0xff] %v260_v27 }
  0xd7   : > { %536 = vxpose.xlu1.b32.cont [8/16] %v829_v28, 128  ;;  %v293_v30 = vpop.trf.xlu1  ;;  %504 = vxpose.xlu0.b32.cont [8/16] %v828_v29, 128  ;;  %v261_v31 = vpop.trf.xlu0  ;;  %v861_v28 = vld [vmem:[%s1263_s4 + $0x378] sm:$0xff]  ;;  %v860_v29 = vld [vmem:[%s1263_s4 + $0x370] sm:$0xff] }
  0xd8   : > { %412 = vst [vmem:[%s1337_s18 + $0x2e0] sm:$0xff] %v293_v30  ;;  %380 = vst [vmem:[%s1337_s18 + $0xe0] sm:$0xff] %v261_v31 }
  0xdb   : > { %537 = vxpose.xlu1.b32.cont [9/16] %v831_v32, 128  ;;  %v294_v34 = vpop.trf.xlu1  ;;  %505 = vxpose.xlu0.b32.cont [9/16] %v830_v33, 128  ;;  %v262_v35 = vpop.trf.xlu0  ;;  %v863_v32 = vld [vmem:[%s1263_s4 + $0x388] sm:$0xff]  ;;  %v862_v33 = vld [vmem:[%s1263_s4 + $0x380] sm:$0xff] }
  0xdc   : > { %414 = vst [vmem:[%s1337_s18 + $0x300] sm:$0xff] %v294_v34  ;;  %382 = vst [vmem:[%s1337_s18 + $0x100] sm:$0xff] %v262_v35 }
  0xdf   : > { %538 = vxpose.xlu1.b32.cont [10/16] %v833_v36, 128  ;;  %v295_v38 = vpop.trf.xlu1  ;;  %506 = vxpose.xlu0.b32.cont [10/16] %v832_v37, 128  ;;  %v263_v39 = vpop.trf.xlu0  ;;  %v865_v36 = vld [vmem:[%s1263_s4 + $0x398] sm:$0xff]  ;;  %v864_v37 = vld [vmem:[%s1263_s4 + $0x390] sm:$0xff] }
  0xe0   : > { %416 = vst [vmem:[%s1337_s18 + $0x320] sm:$0xff] %v295_v38  ;;  %384 = vst [vmem:[%s1337_s18 + $0x120] sm:$0xff] %v263_v39 }
  0xe3   : > { %539 = vxpose.xlu1.b32.cont [11/16] %v835_v40, 128  ;;  %v296_v42 = vpop.trf.xlu1  ;;  %507 = vxpose.xlu0.b32.cont [11/16] %v834_v41, 128  ;;  %v264_v43 = vpop.trf.xlu0  ;;  %v867_v40 = vld [vmem:[%s1263_s4 + $0x3a8] sm:$0xff]  ;;  %v866_v41 = vld [vmem:[%s1263_s4 + $0x3a0] sm:$0xff] }
  0xe4   : > { %418 = vst [vmem:[%s1337_s18 + $0x340] sm:$0xff] %v296_v42  ;;  %386 = vst [vmem:[%s1337_s18 + $0x140] sm:$0xff] %v264_v43 }
  0xe7   : > { %540 = vxpose.xlu1.b32.cont [12/16] %v837_v44, 128  ;;  %v297_v46 = vpop.trf.xlu1  ;;  %508 = vxpose.xlu0.b32.cont [12/16] %v836_v45, 128  ;;  %v265_v47 = vpop.trf.xlu0  ;;  %v869_v44 = vld [vmem:[%s1263_s4 + $0x3b8] sm:$0xff]  ;;  %v868_v45 = vld [vmem:[%s1263_s4 + $0x3b0] sm:$0xff] }
  0xe8   : > { %420 = vst [vmem:[%s1337_s18 + $0x360] sm:$0xff] %v297_v46  ;;  %388 = vst [vmem:[%s1337_s18 + $0x160] sm:$0xff] %v265_v47 }
  0xeb   : > { %541 = vxpose.xlu1.b32.cont [13/16] %v839_v48, 128  ;;  %v298_v50 = vpop.trf.xlu1  ;;  %509 = vxpose.xlu0.b32.cont [13/16] %v838_v49, 128  ;;  %v266_v51 = vpop.trf.xlu0  ;;  %v871_v48 = vld [vmem:[%s1263_s4 + $0x3c8] sm:$0xff]  ;;  %v870_v49 = vld [vmem:[%s1263_s4 + $0x3c0] sm:$0xff] }
  0xec   : > { %422 = vst [vmem:[%s1337_s18 + $0x380] sm:$0xff] %v298_v50  ;;  %390 = vst [vmem:[%s1337_s18 + $0x180] sm:$0xff] %v266_v51 }
  0xef   : > { %542 = vxpose.xlu1.b32.cont [14/16] %v841_v52, 128  ;;  %v299_v54 = vpop.trf.xlu1  ;;  %510 = vxpose.xlu0.b32.cont [14/16] %v840_v53, 128  ;;  %v267_v55 = vpop.trf.xlu0  ;;  %v873_v52 = vld [vmem:[%s1263_s4 + $0x3d8] sm:$0xff]  ;;  %v872_v53 = vld [vmem:[%s1263_s4 + $0x3d0] sm:$0xff] }
  0xf0   : > { %424 = vst [vmem:[%s1337_s18 + $0x3a0] sm:$0xff] %v299_v54  ;;  %392 = vst [vmem:[%s1337_s18 + $0x1a0] sm:$0xff] %v267_v55 }
  0xf3   : > { %543 = vxpose.xlu1.b32.cont [15/16] %v843_v56, 128  ;;  %v300_v58 = vpop.trf.xlu1  ;;  %511 = vxpose.xlu0.b32.cont [15/16] %v842_v57, 128  ;;  %v268_v59 = vpop.trf.xlu0  ;;  %v875_v56 = vld [vmem:[%s1263_s4 + $0x3e8] sm:$0xff]  ;;  %v874_v57 = vld [vmem:[%s1263_s4 + $0x3e0] sm:$0xff] }
  0xf4   : > { %426 = vst [vmem:[%s1337_s18 + $0x3c0] sm:$0xff] %v300_v58  ;;  %394 = vst [vmem:[%s1337_s18 + $0x1c0] sm:$0xff] %v268_v59 }
  0xf7   : > { %544 = vxpose.xlu1.b32.end [16/16] %v845_v60, 128  ;;  %v301_v62 = vpop.trf.xlu1  ;;  %512 = vxpose.xlu0.b32.end [16/16] %v844_v61, 128  ;;  %v269_v63 = vpop.trf.xlu0  ;;  %v877_v60 = vld [vmem:[%s1263_s4 + $0x3f8] sm:$0xff]  ;;  %v876_v61 = vld [vmem:[%s1263_s4 + $0x3f0] sm:$0xff] }
  0xf8   : > { %428 = vst [vmem:[%s1337_s18 + $0x3e0] sm:$0xff] %v301_v62  ;;  %396 = vst [vmem:[%s1337_s18 + $0x1e0] sm:$0xff] %v269_v63 }
  0xfb   : > { %593 = vxpose.xlu1.b32.start [1/16] %v847_v0, 128  ;;  %v350_v2 = vpop.trf.xlu1  ;;  %561 = vxpose.xlu0.b32.start [1/16] %v846_v1, 128  ;;  %v318_v3 = vpop.trf.xlu0 }
  0xfc   : > { %399 = vst [vmem:[%s1337_s18 + $0x208] sm:$0xff] %v350_v2  ;;  %367 = vst [vmem:[%s1337_s18 + $0x8] sm:$0xff] %v318_v3 }
  0xff   : > { %594 = vxpose.xlu1.b32.cont [2/16] %v849_v4, 128  ;;  %v351_v6 = vpop.trf.xlu1  ;;  %562 = vxpose.xlu0.b32.cont [2/16] %v848_v5, 128  ;;  %v319_v7 = vpop.trf.xlu0 }
 0x100   : > { %401 = vst [vmem:[%s1337_s18 + $0x228] sm:$0xff] %v351_v6  ;;  %369 = vst [vmem:[%s1337_s18 + $0x28] sm:$0xff] %v319_v7 }
 0x103   : > { %595 = vxpose.xlu1.b32.cont [3/16] %v851_v8, 128  ;;  %v352_v10 = vpop.trf.xlu1  ;;  %563 = vxpose.xlu0.b32.cont [3/16] %v850_v9, 128  ;;  %v320_v11 = vpop.trf.xlu0 }
 0x104   : > { %403 = vst [vmem:[%s1337_s18 + $0x248] sm:$0xff] %v352_v10  ;;  %371 = vst [vmem:[%s1337_s18 + $0x48] sm:$0xff] %v320_v11 }
 0x107   : > { %596 = vxpose.xlu1.b32.cont [4/16] %v853_v12, 128  ;;  %v353_v14 = vpop.trf.xlu1  ;;  %564 = vxpose.xlu0.b32.cont [4/16] %v852_v13, 128  ;;  %v321_v15 = vpop.trf.xlu0 }
 0x108   : > { %405 = vst [vmem:[%s1337_s18 + $0x268] sm:$0xff] %v353_v14  ;;  %373 = vst [vmem:[%s1337_s18 + $0x68] sm:$0xff] %v321_v15 }
 0x10b   : > { %597 = vxpose.xlu1.b32.cont [5/16] %v855_v16, 128  ;;  %v354_v18 = vpop.trf.xlu1  ;;  %565 = vxpose.xlu0.b32.cont [5/16] %v854_v17, 128  ;;  %v322_v19 = vpop.trf.xlu0 }
 0x10c   : > { %407 = vst [vmem:[%s1337_s18 + $0x288] sm:$0xff] %v354_v18  ;;  %375 = vst [vmem:[%s1337_s18 + $0x88] sm:$0xff] %v322_v19 }
 0x10f   : > { %598 = vxpose.xlu1.b32.cont [6/16] %v857_v20, 128  ;;  %v355_v22 = vpop.trf.xlu1  ;;  %566 = vxpose.xlu0.b32.cont [6/16] %v856_v21, 128  ;;  %v323_v23 = vpop.trf.xlu0 }
 0x110   : > { %409 = vst [vmem:[%s1337_s18 + $0x2a8] sm:$0xff] %v355_v22  ;;  %377 = vst [vmem:[%s1337_s18 + $0xa8] sm:$0xff] %v323_v23 }
 0x113   : > { %599 = vxpose.xlu1.b32.cont [7/16] %v859_v24, 128  ;;  %v356_v26 = vpop.trf.xlu1  ;;  %567 = vxpose.xlu0.b32.cont [7/16] %v858_v25, 128  ;;  %v324_v27 = vpop.trf.xlu0 }
 0x114   : > { %411 = vst [vmem:[%s1337_s18 + $0x2c8] sm:$0xff] %v356_v26  ;;  %379 = vst [vmem:[%s1337_s18 + $0xc8] sm:$0xff] %v324_v27 }
 0x117   : > { %600 = vxpose.xlu1.b32.cont [8/16] %v861_v28, 128  ;;  %v357_v30 = vpop.trf.xlu1  ;;  %568 = vxpose.xlu0.b32.cont [8/16] %v860_v29, 128  ;;  %v325_v31 = vpop.trf.xlu0 }
 0x118   : > { %413 = vst [vmem:[%s1337_s18 + $0x2e8] sm:$0xff] %v357_v30  ;;  %381 = vst [vmem:[%s1337_s18 + $0xe8] sm:$0xff] %v325_v31 }
 0x11b   : > { %601 = vxpose.xlu1.b32.cont [9/16] %v863_v32, 128  ;;  %v358_v34 = vpop.trf.xlu1  ;;  %569 = vxpose.xlu0.b32.cont [9/16] %v862_v33, 128  ;;  %v326_v35 = vpop.trf.xlu0 }
 0x11c   : > { %415 = vst [vmem:[%s1337_s18 + $0x308] sm:$0xff] %v358_v34  ;;  %383 = vst [vmem:[%s1337_s18 + $0x108] sm:$0xff] %v326_v35 }
 0x11f   : > { %602 = vxpose.xlu1.b32.cont [10/16] %v865_v36, 128  ;;  %v359_v38 = vpop.trf.xlu1  ;;  %570 = vxpose.xlu0.b32.cont [10/16] %v864_v37, 128  ;;  %v327_v39 = vpop.trf.xlu0 }
 0x120   : > { %417 = vst [vmem:[%s1337_s18 + $0x328] sm:$0xff] %v359_v38  ;;  %385 = vst [vmem:[%s1337_s18 + $0x128] sm:$0xff] %v327_v39 }
 0x123   : > { %603 = vxpose.xlu1.b32.cont [11/16] %v867_v40, 128  ;;  %v360_v42 = vpop.trf.xlu1  ;;  %571 = vxpose.xlu0.b32.cont [11/16] %v866_v41, 128  ;;  %v328_v43 = vpop.trf.xlu0 }
 0x124   : > { %419 = vst [vmem:[%s1337_s18 + $0x348] sm:$0xff] %v360_v42  ;;  %387 = vst [vmem:[%s1337_s18 + $0x148] sm:$0xff] %v328_v43 }
 0x127   : > { %604 = vxpose.xlu1.b32.cont [12/16] %v869_v44, 128  ;;  %v361_v46 = vpop.trf.xlu1  ;;  %572 = vxpose.xlu0.b32.cont [12/16] %v868_v45, 128  ;;  %v329_v47 = vpop.trf.xlu0 }
 0x128   : > { %421 = vst [vmem:[%s1337_s18 + $0x368] sm:$0xff] %v361_v46  ;;  %389 = vst [vmem:[%s1337_s18 + $0x168] sm:$0xff] %v329_v47 }
 0x12b   : > { %605 = vxpose.xlu1.b32.cont [13/16] %v871_v48, 128  ;;  %v362_v50 = vpop.trf.xlu1  ;;  %573 = vxpose.xlu0.b32.cont [13/16] %v870_v49, 128  ;;  %v330_v51 = vpop.trf.xlu0 }
 0x12c   : > { %423 = vst [vmem:[%s1337_s18 + $0x388] sm:$0xff] %v362_v50  ;;  %391 = vst [vmem:[%s1337_s18 + $0x188] sm:$0xff] %v330_v51 }
 0x12f   : > { %606 = vxpose.xlu1.b32.cont [14/16] %v873_v52, 128  ;;  %v363_v54 = vpop.trf.xlu1  ;;  %574 = vxpose.xlu0.b32.cont [14/16] %v872_v53, 128  ;;  %v331_v55 = vpop.trf.xlu0 }
 0x130   : > { %425 = vst [vmem:[%s1337_s18 + $0x3a8] sm:$0xff] %v363_v54  ;;  %393 = vst [vmem:[%s1337_s18 + $0x1a8] sm:$0xff] %v331_v55 }
 0x133   : > { %607 = vxpose.xlu1.b32.cont [15/16] %v875_v56, 128  ;;  %v364_v58 = vpop.trf.xlu1  ;;  %575 = vxpose.xlu0.b32.cont [15/16] %v874_v57, 128  ;;  %v332_v59 = vpop.trf.xlu0 }
 0x134   : > { %427 = vst [vmem:[%s1337_s18 + $0x3c8] sm:$0xff] %v364_v58  ;;  %395 = vst [vmem:[%s1337_s18 + $0x1c8] sm:$0xff] %v332_v59 }
 0x137   : > { %608 = vxpose.xlu1.b32.end [16/16] %v877_v60, 128  ;;  %v365_v62 = vpop.trf.xlu1  ;;  %576 = vxpose.xlu0.b32.end [16/16] %v876_v61, 128  ;;  %v333_v63 = vpop.trf.xlu0 }
 0x138   : > { %429 = vst [vmem:[%s1337_s18 + $0x3e8] sm:$0xff] %v365_v62  ;;  %397 = vst [vmem:[%s1337_s18 + $0x1e8] sm:$0xff] %v333_v63 }
 0x13b   : > { %v545_v0 = vpop.trf.xlu1  ;;  %v513_v1 = vpop.trf.xlu0 }
 0x13c   : > { %910 = vst [vmem:[%s1337_s18 + $0x210] sm:$0xff] %v545_v0  ;;  %878 = vst [vmem:[%s1337_s18 + $0x10] sm:$0xff] %v513_v1 }
 0x13f   : > { %v546_v2 = vpop.trf.xlu1  ;;  %v514_v3 = vpop.trf.xlu0 }
 0x140   : > { %912 = vst [vmem:[%s1337_s18 + $0x230] sm:$0xff] %v546_v2  ;;  %880 = vst [vmem:[%s1337_s18 + $0x30] sm:$0xff] %v514_v3 }
 0x143   : > { %v547_v4 = vpop.trf.xlu1  ;;  %v515_v5 = vpop.trf.xlu0 }
 0x144   : > { %914 = vst [vmem:[%s1337_s18 + $0x250] sm:$0xff] %v547_v4  ;;  %882 = vst [vmem:[%s1337_s18 + $0x50] sm:$0xff] %v515_v5 }
 0x147   : > { %v548_v6 = vpop.trf.xlu1  ;;  %v516_v7 = vpop.trf.xlu0 }
 0x148   : > { %916 = vst [vmem:[%s1337_s18 + $0x270] sm:$0xff] %v548_v6  ;;  %884 = vst [vmem:[%s1337_s18 + $0x70] sm:$0xff] %v516_v7 }
 0x14b   : > { %v549_v8 = vpop.trf.xlu1  ;;  %v517_v9 = vpop.trf.xlu0 }
 0x14c   : > { %918 = vst [vmem:[%s1337_s18 + $0x290] sm:$0xff] %v549_v8  ;;  %886 = vst [vmem:[%s1337_s18 + $0x90] sm:$0xff] %v517_v9 }
 0x14f   : > { %v550_v10 = vpop.trf.xlu1  ;;  %v518_v11 = vpop.trf.xlu0 }
 0x150   : > { %920 = vst [vmem:[%s1337_s18 + $0x2b0] sm:$0xff] %v550_v10  ;;  %888 = vst [vmem:[%s1337_s18 + $0xb0] sm:$0xff] %v518_v11 }
 0x153   : > { %v551_v12 = vpop.trf.xlu1  ;;  %v519_v13 = vpop.trf.xlu0 }
 0x154   : > { %922 = vst [vmem:[%s1337_s18 + $0x2d0] sm:$0xff] %v551_v12  ;;  %890 = vst [vmem:[%s1337_s18 + $0xd0] sm:$0xff] %v519_v13 }
 0x157   : > { %v552_v14 = vpop.trf.xlu1  ;;  %v520_v15 = vpop.trf.xlu0 }
 0x158   : > { %924 = vst [vmem:[%s1337_s18 + $0x2f0] sm:$0xff] %v552_v14  ;;  %892 = vst [vmem:[%s1337_s18 + $0xf0] sm:$0xff] %v520_v15 }
 0x15b   : > { %v553_v16 = vpop.trf.xlu1  ;;  %v521_v17 = vpop.trf.xlu0 }
 0x15c   : > { %926 = vst [vmem:[%s1337_s18 + $0x310] sm:$0xff] %v553_v16  ;;  %894 = vst [vmem:[%s1337_s18 + $0x110] sm:$0xff] %v521_v17 }
 0x15f   : > { %v554_v18 = vpop.trf.xlu1  ;;  %v522_v19 = vpop.trf.xlu0 }
 0x160   : > { %928 = vst [vmem:[%s1337_s18 + $0x330] sm:$0xff] %v554_v18  ;;  %896 = vst [vmem:[%s1337_s18 + $0x130] sm:$0xff] %v522_v19 }
 0x163   : > { %v555_v20 = vpop.trf.xlu1  ;;  %v523_v21 = vpop.trf.xlu0 }
 0x164   : > { %930 = vst [vmem:[%s1337_s18 + $0x350] sm:$0xff] %v555_v20  ;;  %898 = vst [vmem:[%s1337_s18 + $0x150] sm:$0xff] %v523_v21 }
 0x167   : > { %v556_v22 = vpop.trf.xlu1  ;;  %v524_v23 = vpop.trf.xlu0 }
 0x168   : > { %932 = vst [vmem:[%s1337_s18 + $0x370] sm:$0xff] %v556_v22  ;;  %900 = vst [vmem:[%s1337_s18 + $0x170] sm:$0xff] %v524_v23 }
 0x16b   : > { %v557_v24 = vpop.trf.xlu1  ;;  %v525_v25 = vpop.trf.xlu0 }
 0x16c   : > { %934 = vst [vmem:[%s1337_s18 + $0x390] sm:$0xff] %v557_v24  ;;  %902 = vst [vmem:[%s1337_s18 + $0x190] sm:$0xff] %v525_v25 }
 0x16f   : > { %v558_v26 = vpop.trf.xlu1  ;;  %v526_v27 = vpop.trf.xlu0 }
 0x170   : > { %936 = vst [vmem:[%s1337_s18 + $0x3b0] sm:$0xff] %v558_v26  ;;  %904 = vst [vmem:[%s1337_s18 + $0x1b0] sm:$0xff] %v526_v27 }
 0x173   : > { %v559_v28 = vpop.trf.xlu1  ;;  %v527_v29 = vpop.trf.xlu0 }
 0x174   : > { %938 = vst [vmem:[%s1337_s18 + $0x3d0] sm:$0xff] %v559_v28  ;;  %906 = vst [vmem:[%s1337_s18 + $0x1d0] sm:$0xff] %v527_v29 }
 0x177   : > { %v560_v30 = vpop.trf.xlu1  ;;  %v528_v31 = vpop.trf.xlu0 }
 0x178   : > { %940 = vst [vmem:[%s1337_s18 + $0x3f0] sm:$0xff] %v560_v30  ;;  %908 = vst [vmem:[%s1337_s18 + $0x1f0] sm:$0xff] %v528_v31 }
 0x17b   : > { %v609_v32 = vpop.trf.xlu1  ;;  %v577_v33 = vpop.trf.xlu0 }
 0x17c   : > { %911 = vst [vmem:[%s1337_s18 + $0x218] sm:$0xff] %v609_v32  ;;  %879 = vst [vmem:[%s1337_s18 + $0x18] sm:$0xff] %v577_v33 }
 0x17f   : > { %v610_v34 = vpop.trf.xlu1  ;;  %v578_v35 = vpop.trf.xlu0 }
 0x180   : > { %913 = vst [vmem:[%s1337_s18 + $0x238] sm:$0xff] %v610_v34  ;;  %881 = vst [vmem:[%s1337_s18 + $0x38] sm:$0xff] %v578_v35 }
 0x183   : > { %v611_v36 = vpop.trf.xlu1  ;;  %v579_v37 = vpop.trf.xlu0 }
 0x184   : > { %915 = vst [vmem:[%s1337_s18 + $0x258] sm:$0xff] %v611_v36  ;;  %883 = vst [vmem:[%s1337_s18 + $0x58] sm:$0xff] %v579_v37 }
 0x187   : > { %v612_v38 = vpop.trf.xlu1  ;;  %v580_v39 = vpop.trf.xlu0 }
 0x188   : > { %917 = vst [vmem:[%s1337_s18 + $0x278] sm:$0xff] %v612_v38  ;;  %885 = vst [vmem:[%s1337_s18 + $0x78] sm:$0xff] %v580_v39 }
 0x18b   : > { %v613_v40 = vpop.trf.xlu1  ;;  %v581_v41 = vpop.trf.xlu0 }
 0x18c   : > { %919 = vst [vmem:[%s1337_s18 + $0x298] sm:$0xff] %v613_v40  ;;  %887 = vst [vmem:[%s1337_s18 + $0x98] sm:$0xff] %v581_v41 }
 0x18f   : > { %v614_v42 = vpop.trf.xlu1  ;;  %v582_v43 = vpop.trf.xlu0 }
 0x190   : > { %921 = vst [vmem:[%s1337_s18 + $0x2b8] sm:$0xff] %v614_v42  ;;  %889 = vst [vmem:[%s1337_s18 + $0xb8] sm:$0xff] %v582_v43 }
 0x193   : > { %v615_v44 = vpop.trf.xlu1  ;;  %v583_v45 = vpop.trf.xlu0 }
 0x194   : > { %923 = vst [vmem:[%s1337_s18 + $0x2d8] sm:$0xff] %v615_v44  ;;  %891 = vst [vmem:[%s1337_s18 + $0xd8] sm:$0xff] %v583_v45 }
 0x197   : > { %v616_v46 = vpop.trf.xlu1  ;;  %v584_v47 = vpop.trf.xlu0 }
 0x198   : > { %925 = vst [vmem:[%s1337_s18 + $0x2f8] sm:$0xff] %v616_v46  ;;  %893 = vst [vmem:[%s1337_s18 + $0xf8] sm:$0xff] %v584_v47 }
 0x19b   : > { %v617_v48 = vpop.trf.xlu1  ;;  %v585_v49 = vpop.trf.xlu0 }
 0x19c   : > { %927 = vst [vmem:[%s1337_s18 + $0x318] sm:$0xff] %v617_v48  ;;  %895 = vst [vmem:[%s1337_s18 + $0x118] sm:$0xff] %v585_v49 }
 0x19f   : > { %v618_v50 = vpop.trf.xlu1  ;;  %v586_v51 = vpop.trf.xlu0 }
 0x1a0   : > { %929 = vst [vmem:[%s1337_s18 + $0x338] sm:$0xff] %v618_v50  ;;  %897 = vst [vmem:[%s1337_s18 + $0x138] sm:$0xff] %v586_v51 }
 0x1a3   : > { %v619_v52 = vpop.trf.xlu1  ;;  %v587_v53 = vpop.trf.xlu0 }
 0x1a4   : > { %931 = vst [vmem:[%s1337_s18 + $0x358] sm:$0xff] %v619_v52  ;;  %899 = vst [vmem:[%s1337_s18 + $0x158] sm:$0xff] %v587_v53 }
 0x1a7   : > { %v620_v54 = vpop.trf.xlu1  ;;  %v588_v55 = vpop.trf.xlu0 }
 0x1a8   : > { %933 = vst [vmem:[%s1337_s18 + $0x378] sm:$0xff] %v620_v54  ;;  %901 = vst [vmem:[%s1337_s18 + $0x178] sm:$0xff] %v588_v55 }
 0x1ab   : > { %v621_v56 = vpop.trf.xlu1  ;;  %v589_v57 = vpop.trf.xlu0 }
 0x1ac   : > { %935 = vst [vmem:[%s1337_s18 + $0x398] sm:$0xff] %v621_v56  ;;  %903 = vst [vmem:[%s1337_s18 + $0x198] sm:$0xff] %v589_v57 }
 0x1af   : > { %v622_v58 = vpop.trf.xlu1  ;;  %v590_v59 = vpop.trf.xlu0 }
 0x1b0   : > { %937 = vst [vmem:[%s1337_s18 + $0x3b8] sm:$0xff] %v622_v58  ;;  %905 = vst [vmem:[%s1337_s18 + $0x1b8] sm:$0xff] %v590_v59 }
 0x1b3   : > { %v623_v60 = vpop.trf.xlu1  ;;  %v591_v61 = vpop.trf.xlu0 }
 0x1b4   : > { %939 = vst [vmem:[%s1337_s18 + $0x3d8] sm:$0xff] %v623_v60  ;;  %907 = vst [vmem:[%s1337_s18 + $0x1d8] sm:$0xff] %v591_v61 }
 0x1b7   : > { %v624_v62 = vpop.trf.xlu1  ;;  %v592_v63 = vpop.trf.xlu0 }
 0x1b8   : > { %941 = vst [vmem:[%s1337_s18 + $0x3f8] sm:$0xff] %v624_v62  ;;  %909 = vst [vmem:[%s1337_s18 + $0x1f8] sm:$0xff] %v592_v63 }
 0x1b9   : > { %1058 = shalt.err (!%p1055_p5)
}
 0x1ba   : > { %s1059_s17 = scalar_lea.hbm %s1532_s5, 16384  ;;  %s1063_s24 = scalar_lea.hbm %s1586_s1, 32768 }
 0x1bb   : > { %p1060_p4 = scmp.ne.s32.totalorder %s1532_s5, %s1059_s17  ;;  %p1064_p12 = scmp.lt.u32.totalorder %s1532_s5, %s1586_s1 }
 0x1bc   : > { %p1065_p1 = scmp.lt.u32.totalorder %s1063_s24, %s1059_s17  ;;  %p1067_p8 = scmp.lt.u32.totalorder %s1059_s17, %s1532_s5 }
 0x1bd   : > { %p1061_p7 = pnand %p1060_p4, %p1594_p9 }
 0x1be   : > { %p1066_p3 = por %p1065_p1, %p1064_p12 }
 0x1bf   : > { %p1062_p10 = pneg %p1061_p7 }
 0x1c0   : > { %p1068_p11 = por %p1067_p8, %p1066_p3 }
 0x1c2   : > { %p1069_p0 = pnand %p1068_p11, %p1062_p10 }
 0x1c4   : > { %1072 = shalt.err (!%p1069_p0)
}
 0x1c5   : > { %s1133_s3 = smov 512   ;;  %s1134_s4 = smov 32  }
 0x1c6   : > { %951 = dma.vmem_to_hbm [thread:$0]  (%p1594_p9), %s1534_s29, 16384, %s1532_s5, %s691_s9, %s1133_s3, %s1133_s3, %s1134_s4  }
 0x1c7 PF: > { %s724_s18 = sand.u32 1, %s1107_s6   ;;  %p1595_p6 = scmp.ne.s32.totalorder %s1591_s21, 0 }
 0x1c8   : > { %p1596_p13 = scmp.ge.s32.totalorder %s1127_s11, 2  ;;  %s725_s27 = scalar_lea.sflag [#allocation4], %s724_s18 }
 0x1ca   : > { %p958_p2 = pnand %p1596_p13, %p1595_p6 }
 0x1cc   : > { %1102 = dma.done.wait (!%p958_p2), %s725_s27, 16384  }
 0x1cd   : > { %1104 = vsyncadd (!%p958_p2), %s725_s27, 4294950912  ;;  %s17_s11 = sadd.s32 1, %s1127_s11   ;;  %s1597_s6 = smov %s1111_s7 }
 0x1ce   : > { %p14_p5 = scmp.ge.s32.totalorder %s17_s11, 4   ;;  %s1598_s7 = smov %s1115_s8 }
 0x1cf   : > { %s1599_s8 = smov %s1201_s20  ;;  %s1600_s9 = smov %s1123_s10 }
 0x1d0   : > { %s1601_s10 = smov %s1603_s14  ;;  %16 = sbr.rel (!%p14_p5) target bundleno = 6 (0x6), region = 72 }
 0x1d7   :  { %730 = vsyncpa [#allocation3], 1 }
 0x1d8   :  { %732 = vsyncpa [#allocation3 + $0x1], 1 }
 0x1d9   :  { %733 = vsyncpa [#allocation4], 1 }
 0x1da   :  { %735 = vsyncpa [#allocation4 + $0x1], 1 }

</bundles_post_ra>
